<compile_context>
chip_gen: v5e
topology: v5e:2x2
jax: 0.10.0
libtpu: 0.0.40
codegen_flags: <defaults>
</compile_context>

<pallas_src>
import functools
import math

import jax
import jax.numpy as jnp
from jax.experimental import pallas as pl
from jax.experimental.pallas import tpu as pltpu


def _student_t_kl_kernel(post_loc_ref, post_scale_ref, prior_loc_ref,
                         prior_logscale_ref, x_ref, z_ref, out_ref,
                         *, df: float, batch: int, tile_b: int):
    inv_df = 1.0 / df
    neg_half_dfp1 = -0.5 * (df + 1.0)

    i = pl.program_id(0)

    post_loc = post_loc_ref[...]          # (TB, D)
    post_scale = post_scale_ref[...]      # (TB, D)
    x = x_ref[...]                        # (TB, D) standard normal draws
    z = z_ref[...]                        # (TB, D) Chi2(df) draws

    # StudentT.rsample(): Y = X * rsqrt(Z / df); sample = loc + scale * Y
    y = x * jax.lax.rsqrt(z * inv_df)
    sample = post_loc + post_scale * y

    # Prior standardization: multiply by exp(-logscale) instead of dividing by
    # exp(logscale); computed once on the (1, D) parameter row, broadcast over TB.
    prior_loc = prior_loc_ref[...]                 # (1, D)
    inv_prior_scale = jnp.exp(-prior_logscale_ref[...])   # (1, D)
    yp = (sample - prior_loc) * inv_prior_scale    # (TB, D)

    # log_q - log_p with the shared StudentT norm constant cancelled, the
    # posterior standardized residual yq == y (exact), and the per-element
    # "+ prior_logscale" term folded into the wrapper (exactly sum_D(logscale)
    # after the batch mean).
    kl_elem = (neg_half_dfp1 * (jnp.log1p(y * y * inv_df)
                                - jnp.log1p(yp * yp * inv_df))
               - jnp.log(post_scale))              # (TB, D)

    if batch % tile_b != 0:
        last = pl.num_programs(0) - 1

        @pl.when(i != last)
        def _():
            out_ref[...] = jnp.sum(kl_elem, axis=0, keepdims=True)[None]

        @pl.when(i == last)
        def _():
            # Padded tail rows are undefined (may be NaN/Inf); select drops them.
            row = jax.lax.broadcasted_iota(jnp.int32, kl_elem.shape, 0)
            valid = (i * tile_b + row) < batch
            masked = jnp.where(valid, kl_elem, 0.0)
            out_ref[...] = jnp.sum(masked, axis=0, keepdims=True)[None]
    else:
        out_ref[...] = jnp.sum(kl_elem, axis=0, keepdims=True)[None]


def multivariate_student_t_kl(post_loc, post_scale, prior_loc, prior_logscale,
                              x, z, df, *, tile_b=None):
    """KL(posterior || prior) for the MultivariateStudentT module forward pass.

    post_loc/post_scale/x/z: (B, D) f32; prior_loc/prior_logscale: (1, D) f32.

    The batch axis is tiled with tile_b rows per grid step (~1 MiB streamed per
    input block by default) and marked "parallel", so each block writes its own
    (1, 1, D) partial sum; the final mean over B is a tiny XLA reduce in this
    wrapper. D should be a multiple of 128 (or small enough to be a single full
    block) for lane-dense loads; flatten any leading batch*time dims into B
    before calling.
    """
    B, D = post_loc.shape

    if tile_b is None:
        # ~1 MiB per streamed f32 input block, rounded down to a sublane multiple.
        tile_b = max(8, ((1 << 20) // (4 * D)) // 8 * 8)
    if tile_b >= B:
        tile_b = B                      # single full block (no divisibility constraint)
    else:
        assert tile_b % 8 == 0, "tile_b must be a multiple of 8 (sublane)"
    num_blocks = pl.cdiv(B, tile_b)

    kernel = functools.partial(_student_t_kl_kernel, df=float(df), batch=B,
                               tile_b=tile_b)
    bd_spec = pl.BlockSpec((tile_b, D), lambda i: (i, 0))
    prior_spec = pl.BlockSpec((1, D), lambda i: (0, 0))

    # 4 streamed inputs x 2 pipeline buffers + prior rows + partial-sum output,
    # plus headroom for compiler scratch; capped at 32 MiB (fits v5e/v6e/v7x).
    needed_vmem = (4 * 2 * tile_b * D * 4
                   + 2 * 2 * D * 4
                   + 2 * D * 4)
    vmem_limit = int(min(32 << 20, max(16 << 20, needed_vmem + (2 << 20))))

    partials = pl.pallas_call(
        kernel,
        out_shape=jax.ShapeDtypeStruct((num_blocks, 1, D), jnp.float32),
        grid=(num_blocks,),
        in_specs=[
            bd_spec,      # post_loc
            bd_spec,      # post_scale
            prior_spec,   # prior loc param
            prior_spec,   # prior logscale param
            bd_spec,      # standard normal draws
            bd_spec,      # chi2(df) draws
        ],
        out_specs=pl.BlockSpec((1, 1, D), lambda i: (i, 0, 0)),
        compiler_params=pltpu.CompilerParams(
            # Each block writes its own partial-sum slice -> batch axis is parallel
            # (shardable across both TensorCores on v7x).
            dimension_semantics=("parallel",),
            vmem_limit_bytes=vmem_limit),
    )(post_loc, post_scale, prior_loc, prior_logscale, x, z)

    # Final combine: batch mean of the per-block sums plus the folded-out
    # prior_logscale constant (B * sum_D(logscale) / B == sum_D(logscale)).
    return jnp.sum(partials) / B + jnp.sum(prior_logscale)


def _reference_kl(post_loc, post_scale, prior_loc, prior_logscale, x, z, df):
    """Pure-JAX reference mirroring torch.distributions semantics (un-simplified)."""
    df = float(df)
    c = (0.5 * math.log(df) + 0.5 * math.log(math.pi)
         + math.lgamma(0.5 * df) - math.lgamma(0.5 * (df + 1.0)))
    y = x * jax.lax.rsqrt(z / df)
    sample = post_loc + post_scale * y
    yq = (sample - post_loc) / post_scale
    log_q = -0.5 * (df + 1.0) * jnp.log1p(yq * yq / df) - (jnp.log(post_scale) + c)
    prior_scale = jnp.exp(prior_logscale)
    yp = (sample - prior_loc) / prior_scale
    log_p = -0.5 * (df + 1.0) * jnp.log1p(yp * yp / df) - (jnp.log(prior_scale) + c)
    return jnp.mean(jnp.sum(log_q - log_p, axis=-1))


if __name__ == "__main__":
    key = jax.random.PRNGKey(0)
    B, D = 20, 128         # batch, event dim ("shape" arg of the module)
    scale_hp, df = 0.1, 3  # module __init__ hyperparameters (its loc arg is unused)

    # Deterministic module parameters (reproducing the torch __init__ exactly,
    # including loc = ones(shape) * scale).
    prior_loc = jnp.ones((1, D), jnp.float32) * scale_hp
    prior_logscale = jnp.log(jnp.ones((1, D), jnp.float32) * scale_hp)

    k1, k2, k3, k4 = jax.random.split(key, 4)
    post_loc = jax.random.normal(k1, (B, D), jnp.float32) * 0.5
    post_scale = jax.nn.softplus(jax.random.normal(k2, (B, D), jnp.float32)) + 1e-3

    # rsample randomness: StudentT = Normal * rsqrt(Chi2(df)/df).
    # TODO(synk): Chi2/gamma rejection sampling has no clean in-kernel Pallas
    # equivalent; raw draws come from jax.random and are composed in-kernel.
    x = jax.random.normal(k3, (B, D), jnp.float32)
    z = 2.0 * jax.random.gamma(k4, 0.5 * df, (B, D), jnp.float32)  # Chi2(df)

    ref = _reference_kl(post_loc, post_scale, prior_loc, prior_logscale, x, z, df)

    # Default tiling (single full block at this small B).
    kl = multivariate_student_t_kl(post_loc, post_scale, prior_loc,
                                   prior_logscale, x, z, df)
    jax.block_until_ready(kl)
    assert jnp.allclose(kl, ref, rtol=1e-4, atol=1e-4), (kl, ref)

    # Exercise the multi-block / tail-masked / parallel-partials path too.
    kl_tiled = multivariate_student_t_kl(post_loc, post_scale, prior_loc,
                                         prior_logscale, x, z, df, tile_b=8)
    jax.block_until_ready(kl_tiled)
    assert jnp.allclose(kl_tiled, ref, rtol=1e-4, atol=1e-4), (kl_tiled, ref)

    print("KERNEL_OK")
</pallas_src>

<mosaic_0001>
module attributes {stable_mosaic.version = 11 : i64} {
  func.func @_student_t_kl_kernel(%arg0: i32, %arg1: memref<20x128xf32, #tpu.memory_space<vmem>>, %arg2: memref<20x128xf32, #tpu.memory_space<vmem>>, %arg3: memref<1x128xf32, #tpu.memory_space<vmem>>, %arg4: memref<1x128xf32, #tpu.memory_space<vmem>>, %arg5: memref<20x128xf32, #tpu.memory_space<vmem>>, %arg6: memref<20x128xf32, #tpu.memory_space<vmem>>, %arg7: memref<1x1x128xf32, #tpu.memory_space<vmem>>) attributes {dimension_semantics = [#tpu.dimension_semantics<parallel>], iteration_bounds = array<i64: 1>, scalar_prefetch = 0 : i64, scratch_operands = 0 : i64, tpu.core_type = #tpu.core_type<tc>, window_params = [{transform_indices = @transform_0, window_bounds = array<i64: 20, 128>}, {transform_indices = @transform_1, window_bounds = array<i64: 20, 128>}, {pipeline_mode = #tpu.pipeline_mode<synchronous>, transform_indices = @transform_2, window_bounds = array<i64: 1, 128>}, {pipeline_mode = #tpu.pipeline_mode<synchronous>, transform_indices = @transform_3, window_bounds = array<i64: 1, 128>}, {transform_indices = @transform_4, window_bounds = array<i64: 20, 128>}, {transform_indices = @transform_5, window_bounds = array<i64: 20, 128>}, {transform_indices = @transform_6, window_bounds = array<i64: 1, 1, 128>}]} {
    %c0 = arith.constant 0 : index
    %c0_0 = arith.constant 0 : index
    %0 = vector.load %arg1[%c0, %c0_0] : memref<20x128xf32, #tpu.memory_space<vmem>>, vector<20x128xf32>
    %c0_1 = arith.constant 0 : index
    %c0_2 = arith.constant 0 : index
    %1 = vector.load %arg2[%c0_1, %c0_2] : memref<20x128xf32, #tpu.memory_space<vmem>>, vector<20x128xf32>
    %c0_3 = arith.constant 0 : index
    %c0_4 = arith.constant 0 : index
    %2 = vector.load %arg5[%c0_3, %c0_4] : memref<20x128xf32, #tpu.memory_space<vmem>>, vector<20x128xf32>
    %c0_5 = arith.constant 0 : index
    %c0_6 = arith.constant 0 : index
    %3 = vector.load %arg6[%c0_5, %c0_6] : memref<20x128xf32, #tpu.memory_space<vmem>>, vector<20x128xf32>
    %cst = arith.constant 0.333333343 : f32
    %4 = vector.broadcast %cst : f32 to vector<20x128xf32>
    %5 = arith.mulf %3, %4 : vector<20x128xf32>
    %6 = math.rsqrt %5 : vector<20x128xf32>
    %7 = arith.mulf %2, %6 : vector<20x128xf32>
    %8 = arith.mulf %1, %7 : vector<20x128xf32>
    %9 = arith.addf %0, %8 : vector<20x128xf32>
    %c0_7 = arith.constant 0 : index
    %c0_8 = arith.constant 0 : index
    %10 = vector.load %arg3[%c0_7, %c0_8] : memref<1x128xf32, #tpu.memory_space<vmem>>, vector<1x128xf32>
    %c0_9 = arith.constant 0 : index
    %c0_10 = arith.constant 0 : index
    %11 = vector.load %arg4[%c0_9, %c0_10] : memref<1x128xf32, #tpu.memory_space<vmem>>, vector<1x128xf32>
    %cst_11 = arith.constant 0.000000e+00 : f32
    %12 = vector.broadcast %cst_11 : f32 to vector<1x128xf32>
    %13 = arith.subf %12, %11 : vector<1x128xf32>
    %14 = math.exp %13 : vector<1x128xf32>
    %15 = vector.broadcast %10 : vector<1x128xf32> to vector<20x128xf32>
    %16 = arith.subf %9, %15 : vector<20x128xf32>
    %17 = vector.broadcast %14 : vector<1x128xf32> to vector<20x128xf32>
    %18 = arith.mulf %16, %17 : vector<20x128xf32>
    %19 = arith.mulf %7, %7 : vector<20x128xf32>
    %cst_12 = arith.constant 0.333333343 : f32
    %20 = vector.broadcast %cst_12 : f32 to vector<20x128xf32>
    %21 = arith.mulf %19, %20 : vector<20x128xf32>
    %22 = math.log1p %21 : vector<20x128xf32>
    %23 = arith.mulf %18, %18 : vector<20x128xf32>
    %cst_13 = arith.constant 0.333333343 : f32
    %24 = vector.broadcast %cst_13 : f32 to vector<20x128xf32>
    %25 = arith.mulf %23, %24 : vector<20x128xf32>
    %26 = math.log1p %25 : vector<20x128xf32>
    %27 = arith.subf %22, %26 : vector<20x128xf32>
    %cst_14 = arith.constant -2.000000e+00 : f32
    %28 = vector.broadcast %cst_14 : f32 to vector<20x128xf32>
    %29 = arith.mulf %28, %27 : vector<20x128xf32>
    %30 = math.log %1 : vector<20x128xf32>
    %31 = arith.subf %29, %30 : vector<20x128xf32>
    %cst_15 = arith.constant dense<0.000000e+00> : vector<128xf32>
    %32 = vector.multi_reduction <add>, %31, %cst_15 [0] : vector<20x128xf32> to vector<128xf32>
    %33 = vector.shape_cast %32 : vector<128xf32> to vector<1x128xf32>
    %34 = vector.shape_cast %33 : vector<1x128xf32> to vector<1x1x128xf32>
    %c0_16 = arith.constant 0 : index
    %c0_17 = arith.constant 0 : index
    %c0_18 = arith.constant 0 : index
    %35 = vector.load %arg7[%c0_16, %c0_17, %c0_18] : memref<1x1x128xf32, #tpu.memory_space<vmem>>, vector<1x1x128xf32>
    tpu.vector_store %arg7[%c0_16, %c0_17, %c0_18], %34 {strides = array<i32>} : memref<1x1x128xf32, #tpu.memory_space<vmem>>, vector<1x1x128xf32>,
    return
  }
  func.func @transform_0(%arg0: i32) -> (i32, i32) {
    %c0_i32 = arith.constant 0 : i32
    %c0_i32_0 = arith.constant 0 : i32
    return %arg0, %c0_i32 : i32, i32
  }
  func.func @transform_1(%arg0: i32) -> (i32, i32) {
    %c0_i32 = arith.constant 0 : i32
    %c0_i32_0 = arith.constant 0 : i32
    return %arg0, %c0_i32 : i32, i32
  }
  func.func @transform_2(%arg0: i32) -> (i32, i32) {
    %c0_i32 = arith.constant 0 : i32
    %c0_i32_0 = arith.constant 0 : i32
    %c0_i32_1 = arith.constant 0 : i32
    return %c0_i32, %c0_i32_0 : i32, i32
  }
  func.func @transform_3(%arg0: i32) -> (i32, i32) {
    %c0_i32 = arith.constant 0 : i32
    %c0_i32_0 = arith.constant 0 : i32
    %c0_i32_1 = arith.constant 0 : i32
    return %c0_i32, %c0_i32_0 : i32, i32
  }
  func.func @transform_4(%arg0: i32) -> (i32, i32) {
    %c0_i32 = arith.constant 0 : i32
    %c0_i32_0 = arith.constant 0 : i32
    return %arg0, %c0_i32 : i32, i32
  }
  func.func @transform_5(%arg0: i32) -> (i32, i32) {
    %c0_i32 = arith.constant 0 : i32
    %c0_i32_0 = arith.constant 0 : i32
    return %arg0, %c0_i32 : i32, i32
  }
  func.func @transform_6(%arg0: i32) -> (i32, i32, i32) {
    %c0_i32 = arith.constant 0 : i32
    %c0_i32_0 = arith.constant 0 : i32
    %c0_i32_1 = arith.constant 0 : i32
    return %arg0, %c0_i32, %c0_i32_0 : i32, i32, i32
  }
}

</mosaic_0001>

<bundles_post_ra>
// kernel: tpu_custom_call.1
= control target key start
LH: loop header
LB: loop body
LE: loop exit
PB: predicated region body
PF: predicated region fallthrough
CT: control target
= control target key end

     0   :  { %11 = vsyncpa [#allocation3], 0  ;;  %s540_s0 = inlined_call_operand.hbm [shape: f32[20,128], index: 0, kind: input, shape index: {}]   ;;  %s541_s1 = inlined_call_operand.hbm [shape: f32[20,128], index: 1, kind: input, shape index: {}]   ;;  %s542_s2 = inlined_call_operand.vmem [shape: f32[1,128], index: 2, kind: input, shape index: {}]   ;;  %s543_s3 = inlined_call_operand.vmem [shape: f32[1,128], index: 3, kind: input, shape index: {}]   ;;  %s544_s4 = inlined_call_operand.hbm [shape: f32[20,128], index: 4, kind: input, shape index: {}]   ;;  %s545_s5 = inlined_call_operand.hbm [shape: f32[20,128], index: 5, kind: input, shape index: {}]   ;;  %s546_s6 = inlined_call_operand.hbm [shape: f32[1,1,128], index: 6, kind: output, shape index: {}]  }
   0x1   :  { %12 = vsyncpa [#allocation6], 0 }
   0x2   :  { %13 = vsyncpa [#allocation9], 0 }
   0x3   :  { %14 = vsyncpa [#allocation4], 0  ;;  %s32_s23 = sshll.u32 %s541_s1, 4  ;;  %s431_s24 = smov [#allocation5]   ;;  %s33_s23 = int_to_ptr.hbm [resolvable:$true] %s32_s23 }
   0x4   :  { %s34_s25 = sshll.u32 %s431_s24, 4  ;;  %s19_s28 = sshll.u32 %s540_s0, 4  ;;  %s35_s25 = int_to_ptr.vmem [resolvable:$true] %s34_s25  ;;  %s20_s28 = int_to_ptr.hbm [resolvable:$true] %s19_s28 }
   0x5   :  { %s432_s29 = smov 128   ;;  %s433_s30 = smov 8  }
   0x6   :  { %40 = dma.hbm_to_vmem [thread:$0]  %s33_s23, 384, %s35_s25, [#allocation6], %s432_s29, %s432_s29, %s433_s30  }
   0x7   :  { %s434_s7 = smov [#allocation2]   ;;  %s49_s11 = sshll.u32 %s544_s4, 4  ;;  %s50_s11 = int_to_ptr.hbm [resolvable:$true] %s49_s11 }
   0x8   :  { %s21_s8 = sshll.u32 %s434_s7, 4  ;;  %s62_s13 = sshll.u32 %s545_s5, 4  ;;  %s22_s8 = int_to_ptr.vmem [resolvable:$true] %s21_s8  ;;  %s63_s13 = int_to_ptr.hbm [resolvable:$true] %s62_s13 }
   0x9   :  { %27 = dma.hbm_to_vmem [thread:$0]  %s20_s28, 384, %s22_s8, [#allocation3], %s432_s29, %s432_s29, %s433_s30  }
   0xa   :  { %s435_s14 = smov [#allocation7]   ;;  %s436_s0 = smov [#allocation8]  }
   0xb   :  { %s51_s15 = sshll.u32 %s435_s14, 4  ;;  %s64_s16 = sshll.u32 %s436_s0, 4  ;;  %s52_s15 = int_to_ptr.vmem [resolvable:$true] %s51_s15  ;;  %s65_s16 = int_to_ptr.vmem [resolvable:$true] %s64_s16 }
   0xc   :  { %57 = dma.hbm_to_vmem [thread:$0]  %s50_s11, 384, %s52_s15, [#allocation6], %s432_s29, %s432_s29, %s433_s30  }
   0xd   :  { %70 = dma.hbm_to_vmem [thread:$0]  %s63_s13, 384, %s65_s16, [#allocation9], %s432_s29, %s432_s29, %s433_s30  }
   0xe   :  { %423 = dma.done.wait [#allocation3], 384  }
   0xf   :  { %424 = vsyncadd [#allocation3], 4294966912 }
  0x10   :  { %425 = dma.done.wait [#allocation6], 768  }
  0x11   :  { %426 = vsyncadd [#allocation6], 4294966528 }
  0x12   :  { %427 = dma.done.wait [#allocation9], 384  }
  0x13   :  { %428 = vsyncadd [#allocation9], 4294966912  ;;  %v96_v0 = vld [vmem:[#allocation8] sm:$0xff]  ;;  %v97_v1 = vld [vmem:[#allocation8 + $0x8] sm:$0xff]  ;;  %vm240_vm15 = vcmask 1043456   ;;  %s257_s21 = sshll.u32 %s546_s6, 4  ;;  %s258_s21 = int_to_ptr.hbm [resolvable:$true] %s257_s21 }
  0x14   :  { %v98_v2 = vld [vmem:[#allocation8 + $0x10] sm:$0xf]  ;;  %v99_v3 = vmul.f32 0.33333334, %v96_v0  ;;  %v100_v4 = vmul.f32 0.33333334, %v97_v1 }
  0x15   :  { %v101_v5 = vmul.f32 0.33333334, %v98_v2  ;;  %v142_v6 = vld [vmem:[%s543_s3] sm:$0x1]  ;;  %v93_v24 = vld [vmem:[#allocation7] sm:$0xff]  ;;  %v94_v28 = vld [vmem:[#allocation7 + $0x8] sm:$0xff] }
  0x16   :  { %277 = vrsqrt.f32 %v99_v3  ;;  %v143_v7 = vsub.f32 0.0, %v142_v6  ;;  %vm108_vm0 = vweird.f32 %v99_v3  ;;  %vm118_vm2 = vweird.f32 %v100_v4  ;;  %v90_v30 = vld [vmem:[#allocation5] sm:$0xff]  ;;  %v95_v31 = vld [vmem:[#allocation7 + $0x10] sm:$0xf]  ;;  %v500_v39 = vld [vmem:[#allocation5 + $0x10] sm:$0xf] }
  0x17   :  { %279 = vrsqrt.f32 %v100_v4  ;;  %vm128_vm4 = vweird.f32 %v101_v5  ;;  %v91_v35 = vld [vmem:[#allocation5 + $0x8] sm:$0xff]  ;;  %v88_v42 = vld [vmem:[#allocation2 + $0x8] sm:$0xff]  ;;  %v89_v47 = vld [vmem:[#allocation2 + $0x10] sm:$0xf] }
  0x18   :  { %281 = vrsqrt.f32 %v101_v5  ;;  %v144_v13 = vmul.f32 1.442695, %v143_v7  ;;  %v87_v38 = vld [vmem:[#allocation2] sm:$0xff] }
  0x19   :  { %v276_v45 = vld [vmem:[%s542_s2] ss:$0 sm:$0xff]  ;;  %s437_s2 = smov [#allocation10]  }
  0x1a   :  { %283 = vpow2.f32 %v144_v13  ;;  %s255_s18 = sshll.u32 %s437_s2, 4  ;;  %s256_s18 = int_to_ptr.vmem [resolvable:$true] %s255_s18 }
  0x1c   :  { %v278_v8 = vpop.eup %277 }
  0x1d   :  { %v280_v9 = vpop.eup %279  ;;  %v103_v10 = vmul.f32 %v278_v8, %v99_v3  ;;  %vm109_vm1 = vweird.f32 %v278_v8 }
  0x1e   :  { %v282_v11 = vpop.eup %281  ;;  %v113_v12 = vmul.f32 %v280_v9, %v100_v4  ;;  %vm119_vm3 = vweird.f32 %v280_v9  ;;  %vm488_vm6 = vmor %vm108_vm0, %vm109_vm1 }
  0x1f   :  { %v104_v14 = vmul.f32 %v278_v8, %v103_v10  ;;  %v123_v15 = vmul.f32 %v282_v11, %v101_v5  ;;  %vm129_vm5 = vweird.f32 %v282_v11  ;;  %vm492_vm7 = vmor %vm118_vm2, %vm119_vm3 }
  0x20   :  { %v114_v16 = vmul.f32 %v280_v9, %v113_v12  ;;  %vm130_vm8 = vmor %vm128_vm4, %vm129_vm5  ;;  %v284_v34 = vpop.eup %283 }
  0x21   :  { %v105_v17 = vmul.f32 0.5, %v104_v14  ;;  %v124_v18 = vmul.f32 %v282_v11, %v123_v15  ;;  %v153_v49 = vperm.slane %v284_v34, 0 }
  0x22   :  { %v115_v19 = vmul.f32 0.5, %v114_v16 }
  0x23   :  { %v106_v20 = vsub.f32 1.5, %v105_v17  ;;  %v125_v21 = vmul.f32 0.5, %v124_v18 }
  0x24   :  { %v116_v23 = vsub.f32 1.5, %v115_v19 }
  0x25   :  { %v107_v25 = vmul.f32 %v278_v8, %v106_v20  ;;  %v126_v27 = vsub.f32 1.5, %v125_v21 }
  0x26   :  { %v117_v29 = vmul.f32 %v280_v9, %v116_v23 }
  0x27   :  { %v111_v32 = vsel %vm488_vm6, %v278_v8, %v107_v25  ;;  %v127_v33 = vmul.f32 %v282_v11, %v126_v27 }
  0x28   :  { %v121_v36 = vsel %vm492_vm7, %v280_v9, %v117_v29  ;;  %v132_v37 = vmul.f32 %v111_v32, %v93_v24 }
  0x29   :  { %v131_v40 = vsel %vm130_vm8, %v282_v11, %v127_v33  ;;  %v133_v41 = vmul.f32 %v121_v36, %v94_v28 }
  0x2a   :  { %v134_v43 = vmul.f32 %v131_v40, %v95_v31  ;;  %v135_v44 = vmul.f32 %v132_v37, %v90_v30  ;;  %v158_v46 = vmul.f32 %v132_v37, %v132_v37 }
  0x2b   :  { %v136_v48 = vmul.f32 %v133_v41, %v91_v35  ;;  %v159_v50 = vmul.f32 %v133_v41, %v133_v41 }
  0x2c   :  { %v137_v51 = vmul.f32 %v134_v43, %v500_v39  ;;  %v138_v52 = vadd.f32 %v135_v44, %v87_v38  ;;  %v160_v53 = vmul.f32 %v134_v43, %v134_v43  ;;  %v161_v54 = vmul.f32 0.33333334, %v158_v46 }
  0x2d   :  { %v139_v55 = vadd.f32 %v136_v48, %v88_v42  ;;  %v162_v56 = vmul.f32 0.33333334, %v159_v50 }
  0x2e   :  { %v140_v57 = vadd.f32 %v137_v51, %v89_v47  ;;  %v149_v58 = vsub.f32 %v138_v52, %v276_v45  ;;  %v506_v60 = vmul.f32 0.33333334, %v160_v53  ;;  %v164_v61 = vadd.f32 1.0, %v161_v54 }
  0x2f   :  { %v150_v59 = vsub.f32 %v139_v55, %v276_v45  ;;  %v173_v0 = vadd.f32 1.0, %v162_v56  ;;  %v167_v5 = vmul.f32 -0.5, %v161_v54  ;;  %v176_v7 = vmul.f32 -0.5, %v162_v56 }
  0x30   :  { %v151_v62 = vsub.f32 %v140_v57, %v276_v45  ;;  %v155_v63 = vmul.f32 %v153_v49, %v149_v58  ;;  %285 = vlog2.f32 %v164_v61  ;;  %v182_v3 = vadd.f32 1.0, %v506_v60 }
  0x31   :  { %v156_v1 = vmul.f32 %v153_v49, %v150_v59  ;;  %287 = vlog2.f32 %v173_v0  ;;  %v170_v10 = vand.u32 2147483647, %v161_v54  ;;  %v185_v12 = vmul.f32 -0.5, %v506_v60 }
  0x32   :  { %v157_v2 = vmul.f32 %v153_v49, %v151_v62  ;;  %v191_v4 = vmul.f32 %v155_v63, %v155_v63  ;;  %289 = vlog2.f32 %v90_v30  ;;  %v168_v15 = vadd.f32 1.0, %v167_v5 }
  0x33   :  { %v192_v6 = vmul.f32 %v156_v1, %v156_v1  ;;  %291 = vlog2.f32 %v182_v3  ;;  %v177_v19 = vadd.f32 1.0, %v176_v7  ;;  %vm510_vm9 = vcmp.lt.f32.partialorder %v170_v10, 0.0004427343 }
  0x34   :  { %v193_v8 = vmul.f32 %v157_v2, %v157_v2  ;;  %v194_v9 = vmul.f32 0.33333334, %v191_v4  ;;  %293 = vlog2.f32 %v91_v35  ;;  %v179_v23 = vand.u32 2147483647, %v162_v56 }
  0x35   :  { %v195_v11 = vmul.f32 0.33333334, %v192_v6  ;;  %v186_v25 = vadd.f32 1.0, %v185_v12  ;;  %v169_v31 = vmul.f32 %v168_v15, %v161_v54  ;;  %v178_v36 = vmul.f32 %v177_v19, %v162_v56 }
  0x36   :  { %v196_v13 = vmul.f32 0.33333334, %v193_v8  ;;  %v197_v14 = vadd.f32 1.0, %v194_v9  ;;  %v200_v16 = vmul.f32 -0.5, %v194_v9  ;;  %v286_v18 = vpop.eup %285  ;;  %v203_v26 = vand.u32 2147483647, %v194_v9 }
  0x37   :  { %v206_v17 = vadd.f32 1.0, %v195_v11  ;;  %v209_v20 = vmul.f32 -0.5, %v195_v11  ;;  %v288_v21 = vpop.eup %287  ;;  %v166_v30 = vmul.f32 0.6931472, %v286_v18  ;;  %v212_v32 = vand.u32 2147483647, %v195_v11 }
  0x38   :  { %295 = vlog2.f32 %v197_v14  ;;  %v201_v24 = vadd.f32 1.0, %v200_v16  ;;  %v215_v28 = vadd.f32 1.0, %v196_v13  ;;  %v290_v29 = vpop.eup %289  ;;  %v218_v33 = vmul.f32 -0.5, %v196_v13 }
  0x39   :  { %297 = vlog2.f32 %v206_v17  ;;  %v210_v27 = vadd.f32 1.0, %v209_v20  ;;  %v292_v34 = vpop.eup %291  ;;  %v175_v35 = vmul.f32 0.6931472, %v288_v21  ;;  %v188_v37 = vand.u32 2147483647, %v506_v60 }
  0x3a   :  { %299 = vlog2.f32 %v215_v28  ;;  %v294_v38 = vpop.eup %293  ;;  %vm515_vm10 = vcmp.lt.f32.partialorder %v179_v23, 0.0004427343  ;;  %v202_v41 = vmul.f32 %v201_v24, %v194_v9  ;;  %v219_v42 = vadd.f32 1.0, %v218_v33 }
  0x3b   :  { %301 = vlog2.f32 %v500_v39  ;;  %v187_v44 = vmul.f32 %v186_v25, %v506_v60  ;;  %vm521_vm11 = vcmp.lt.f32.partialorder %v203_v26, 0.0004427343  ;;  %v211_v46 = vmul.f32 %v210_v27, %v195_v11 }
  0x3c   :  { %v221_v47 = vand.u32 2147483647, %v196_v13  ;;  %v172_v49 = vsel %vm510_vm9, %v169_v31, %v166_v30  ;;  %v184_v50 = vmul.f32 0.6931472, %v292_v34  ;;  %vm213_vm12 = vcmp.lt.f32.partialorder %v212_v32, 0.0004427343 }
  0x3d   :  { %v181_v52 = vsel %vm515_vm10, %v178_v36, %v175_v35  ;;  %vm529_vm13 = vcmp.lt.f32.partialorder %v188_v37, 0.0004427343  ;;  %v220_v55 = vmul.f32 %v219_v42, %v196_v13  ;;  %v231_v59 = vmul.f32 0.6931472, %v290_v29 }
  0x3e   :  { %v296_v43 = vpop.eup %295  ;;  %vm222_vm14 = vcmp.lt.f32.partialorder %v221_v47, 0.0004427343  ;;  %v190_v61 = vsel %vm529_vm13, %v187_v44, %v184_v50  ;;  %v233_v0 = vmul.f32 0.6931472, %v294_v38 }
  0x3f   :  { %v298_v48 = vpop.eup %297  ;;  %v199_v51 = vmul.f32 0.6931472, %v296_v43 }
  0x40   :  { %v208_v53 = vmul.f32 0.6931472, %v298_v48  ;;  %v300_v56 = vpop.eup %299 }
  0x41   :  { %v205_v54 = vsel %vm521_vm11, %v202_v41, %v199_v51  ;;  %v302_v60 = vpop.eup %301  ;;  %v217_v62 = vmul.f32 0.6931472, %v300_v56 }
  0x42   :  { %v214_v57 = vsel %vm213_vm12, %v211_v46, %v208_v53  ;;  %v224_v58 = vsub.f32 %v172_v49, %v205_v54  ;;  %v235_v5 = vmul.f32 0.6931472, %v302_v60 }
  0x43   :  { %v225_v63 = vsub.f32 %v181_v52, %v214_v57  ;;  %v223_v2 = vsel %vm222_vm14, %v220_v55, %v217_v62 }
  0x44   :  { %v227_v1 = vmul.f32 -2.0, %v224_v58  ;;  %v226_v4 = vsub.f32 %v190_v61, %v223_v2 }
  0x45   :  { %v228_v3 = vmul.f32 -2.0, %v225_v63 }
  0x46   :  { %v236_v6 = vsub.f32 %v227_v1, %v231_v59  ;;  %v229_v8 = vmul.f32 -2.0, %v226_v4 }
  0x47   :  { %v237_v7 = vsub.f32 %v228_v3, %v233_v0 }
  0x48   :  { %v238_v10 = vsub.f32 %v229_v8, %v235_v5 }
  0x49   :  { %v239_v9 = vadd.f32 %v237_v7, %v236_v6 }
  0x4a   :  { %v241_v11 = vsel %vm240_vm15, %v238_v10, 0.0 }
  0x4b   :  { %v242_v12 = vadd.f32 %v241_v11, %v239_v9 }
  0x4d   :  { %v243_v13 = vrot.slane %v242_v12, 4 }
  0x4f   :  { %v244_v14 = vadd.f32 %v243_v13, %v242_v12 }
  0x51   :  { %v245_v15 = vrot.slane %v244_v14, 2 }
  0x53   :  { %v246_v16 = vadd.f32 %v245_v15, %v244_v14 }
  0x55   :  { %v247_v17 = vrot.slane %v246_v16, 1 }
  0x57   :  { %v248_v18 = vadd.f32 %v247_v17, %v246_v16 }
  0x59   :  { %249 = vst [vmem:[#allocation10] sm:$0x1] %v248_v18 }
  0x5a   :  { %260 = dma.vmem_to_hbm [thread:$0]  %s256_s18, 16, %s258_s21, [#allocation4]  }
  0x5b   :  { %429 = dma.done.wait [#allocation4], 16  }
  0x5c   :  { %430 = vsyncadd [#allocation4], 4294967280 }
  0x5d   :  { %265 = vsyncpa [#allocation3], 1 }
  0x5e   :  { %266 = vsyncpa [#allocation6], 1 }
  0x5f   :  { %267 = vsyncpa [#allocation9], 1 }
  0x60   :  { %268 = vsyncpa [#allocation4], 1 }

</bundles_post_ra>
